<compile_context>
chip_gen: v7x
topology: tpu7x:2x2x1
jax: 0.10.0
libtpu: 0.0.40
codegen_flags: <defaults>
</compile_context>

<pallas_src>
import jax
import jax.numpy as jnp
from jax.experimental import pallas as pl
from jax.experimental.pallas import tpu as pltpu

HIDDEN = 256
LANE = 128


def _round_up(n, m):
    return ((n + m - 1) // m) * m


def _value_net_kernel(x_ref, w1_ref, b1_ref, w2_ref, b2_ref, w3_ref, b3_ref,
                      o_ref):
    # x_ref: (TB, K_pad) bf16, weights bf16, biases f32, b3 scalar in SMEM.
    x = x_ref[...]                                        # bf16, no extra cast

    # fc1 + relu (MXU bf16, f32 accumulate)
    h1 = jnp.dot(x, w1_ref[...], preferred_element_type=jnp.float32)
    h1 = jnp.maximum(h1 + b1_ref[...], 0.0)               # (TB, 256) f32

    # fc2 + relu
    h2 = jnp.dot(h1.astype(jnp.bfloat16), w2_ref[...],
                 preferred_element_type=jnp.float32)
    h2 = jnp.maximum(h2 + b2_ref[...], 0.0)               # (TB, 256) f32

    # fc3 (output width 1): VPU multiply + lane reduce instead of an N=1 MXU
    # matmul that would waste 255/256 MXU columns.
    out = jnp.sum(h2 * w3_ref[...], axis=-1, keepdims=True) + b3_ref[0, 0]
    o_ref[...] = out.astype(o_ref.dtype)                  # (TB, 1)


def value_network_forward(x, params, *, block_b=1024):
    """x: (B, obs_dim) float32.  Returns (B, 1) float32."""
    w1, b1, w2, b2, w3, b3 = (params["w1"], params["b1"], params["w2"],
                              params["b2"], params["w3"], params["b3"])
    B, obs_dim = x.shape
    H = w1.shape[1]

    # --- host-side layout prep -------------------------------------------
    # Pad K (obs features) to full 128-lane tiles; zeros contribute nothing.
    k_pad = _round_up(max(obs_dim, LANE), LANE)
    # Batch tile: sublane/MXU aligned, capped so VMEM stays comfortable even
    # on v7x's 64 MiB (TB=1024: <2 MiB of activation tiles + <0.5 MiB weights).
    tb = min(block_b, max(8, _round_up(B, 8)))
    b_pad = pl.cdiv(B, tb) * tb

    x_p = jnp.zeros((b_pad, k_pad), jnp.bfloat16)
    x_p = x_p.at[:B, :obs_dim].set(x.astype(jnp.bfloat16))
    w1_p = jnp.zeros((k_pad, H), jnp.bfloat16)
    w1_p = w1_p.at[:obs_dim, :].set(w1.astype(jnp.bfloat16))
    w2_b = w2.astype(jnp.bfloat16)
    w3_row = w3.reshape(1, H).astype(jnp.float32)          # fc3 weight as a row
    b1_r = b1.reshape(1, H).astype(jnp.float32)
    b2_r = b2.reshape(1, H).astype(jnp.float32)
    b3_r = b3.reshape(1, 1).astype(jnp.float32)            # scalar -> SMEM

    grid = (b_pad // tb,)
    resident = lambda shape: pl.BlockSpec(shape, lambda i: (0, 0))

    flops = 2 * b_pad * (k_pad * H + H * H + H)
    bytes_accessed = (x_p.size * 2 + w1_p.size * 2 + w2_b.size * 2
                      + (w3_row.size + b1_r.size + b2_r.size + b3_r.size) * 4
                      + b_pad * 4)

    out = pl.pallas_call(
        _value_net_kernel,
        out_shape=jax.ShapeDtypeStruct((b_pad, 1), jnp.float32),
        grid=grid,
        in_specs=[
            pl.BlockSpec((tb, k_pad), lambda i: (i, 0)),   # x: pipelined
            resident((k_pad, H)),                          # w1 (VMEM-resident)
            resident((1, H)),                              # b1
            resident((H, H)),                              # w2
            resident((1, H)),                              # b2
            resident((1, H)),                              # w3 row
            pl.BlockSpec(memory_space=pltpu.MemorySpace.SMEM),  # b3 scalar
        ],
        out_specs=pl.BlockSpec((tb, 1), lambda i: (i, 0)),
        compiler_params=pltpu.CompilerParams(
            dimension_semantics=("parallel",)),
        cost_estimate=pl.CostEstimate(flops=flops, transcendentals=0,
                                      bytes_accessed=bytes_accessed),
    )(x_p, w1_p, b1_r, w2_b, b2_r, w3_row, b3_r)

    return out[:B]


def xavier_uniform(key, fan_in, fan_out, dtype=jnp.float32):
    # Matches torch.nn.init.xavier_uniform_ (gain=1).
    limit = jnp.sqrt(6.0 / (fan_in + fan_out))
    return jax.random.uniform(key, (fan_in, fan_out), dtype,
                              minval=-limit, maxval=limit)


def init_params(key, obs_dim):
    k1, k2, k3 = jax.random.split(key, 3)
    return {
        # Weights stored as (in, out) = transpose of torch's (out, in) layout.
        "w1": xavier_uniform(k1, obs_dim, HIDDEN),
        "b1": jnp.zeros((1, HIDDEN), jnp.float32),
        "w2": xavier_uniform(k2, HIDDEN, HIDDEN),
        "b2": jnp.zeros((1, HIDDEN), jnp.float32),
        "w3": xavier_uniform(k3, HIDDEN, 1),
        "b3": jnp.zeros((1, 1), jnp.float32),
    }


def reference_forward_bf16(x, params):
    # Matches the kernel's precision policy: bf16 MXU inputs, f32 accumulate.
    w1 = params["w1"].astype(jnp.bfloat16)
    w2 = params["w2"].astype(jnp.bfloat16)
    h1 = jnp.dot(x.astype(jnp.bfloat16), w1,
                 preferred_element_type=jnp.float32) + params["b1"]
    h1 = jnp.maximum(h1, 0.0)
    h2 = jnp.dot(h1.astype(jnp.bfloat16), w2,
                 preferred_element_type=jnp.float32) + params["b2"]
    h2 = jnp.maximum(h2, 0.0)
    return h2 @ params["w3"].astype(jnp.float32) + params["b3"]


def reference_forward_f32(x, params):
    h1 = jnp.maximum(x @ params["w1"] + params["b1"], 0.0)
    h2 = jnp.maximum(h1 @ params["w2"] + params["b2"], 0.0)
    return h2 @ params["w3"] + params["b3"]


if __name__ == "__main__":
    key = jax.random.PRNGKey(0)
    k_params, k_x = jax.random.split(key)

    batch, obs_dim = 8, 16        # small shapes consistent with a Box obs space
    params = init_params(k_params, obs_dim)
    x = jax.random.normal(k_x, (batch, obs_dim), jnp.float32)

    out = value_network_forward(x, params)
    out = jax.block_until_ready(out)

    ref = reference_forward_bf16(x, params)
    ref_f32 = reference_forward_f32(x, params)
    assert out.shape == (batch, 1)
    assert jnp.allclose(out, ref, atol=1e-2, rtol=1e-2), "mismatch vs reference"
    # Informational: drift vs pure-f32 torch-equivalent path (bf16 weights).
    _ = jnp.max(jnp.abs(out - ref_f32))

    print("KERNEL_OK")
</pallas_src>

<mosaic_0001>
module attributes {stable_mosaic.version = 11 : i64} {
  func.func @_value_net_kernel(%arg0: i32, %arg1: memref<8x128xbf16, #tpu.memory_space<vmem>>, %arg2: memref<128x256xbf16, #tpu.memory_space<vmem>>, %arg3: memref<1x256xf32, #tpu.memory_space<vmem>>, %arg4: memref<256x256xbf16, #tpu.memory_space<vmem>>, %arg5: memref<1x256xf32, #tpu.memory_space<vmem>>, %arg6: memref<1x256xf32, #tpu.memory_space<vmem>>, %arg7: memref<1x1xf32, #tpu.memory_space<smem>>, %arg8: memref<8x1xf32, #tpu.memory_space<vmem>>) attributes {dimension_semantics = [#tpu.dimension_semantics<parallel>], iteration_bounds = array<i64: 1>, scalar_prefetch = 0 : i64, scratch_operands = 0 : i64, tpu.core_type = #tpu.core_type<tc>, window_params = [{transform_indices = @transform_0, window_bounds = array<i64: 8, 128>}, {pipeline_mode = #tpu.pipeline_mode<synchronous>, transform_indices = @transform_1, window_bounds = array<i64: 128, 256>}, {pipeline_mode = #tpu.pipeline_mode<synchronous>, transform_indices = @transform_2, window_bounds = array<i64: 1, 256>}, {pipeline_mode = #tpu.pipeline_mode<synchronous>, transform_indices = @transform_3, window_bounds = array<i64: 256, 256>}, {pipeline_mode = #tpu.pipeline_mode<synchronous>, transform_indices = @transform_4, window_bounds = array<i64: 1, 256>}, {pipeline_mode = #tpu.pipeline_mode<synchronous>, transform_indices = @transform_5, window_bounds = array<i64: 1, 256>}, {transform_indices = @transform_6, window_bounds = array<i64: 1, 1>}, {transform_indices = @transform_7, window_bounds = array<i64: 8, 1>}]} {
    %c0 = arith.constant 0 : index
    %c0_0 = arith.constant 0 : index
    %0 = vector.load %arg1[%c0, %c0_0] : memref<8x128xbf16, #tpu.memory_space<vmem>>, vector<8x128xbf16>
    %c0_1 = arith.constant 0 : index
    %c0_2 = arith.constant 0 : index
    %1 = vector.load %arg2[%c0_1, %c0_2] : memref<128x256xbf16, #tpu.memory_space<vmem>>, vector<128x256xbf16>
    %cst = arith.constant dense<0.000000e+00> : vector<8x256xf32>
    %2 = tpu.matmul %0, %1, %cst {dimension_numbers = #tpu.dot_dimension_numbers<[1], [0], [0], [1], [0, 0, 1, 1], [], []>} : vector<8x128xbf16>, vector<128x256xbf16>, vector<8x256xf32> -> vector<8x256xf32>
    %c0_3 = arith.constant 0 : index
    %c0_4 = arith.constant 0 : index
    %3 = vector.load %arg3[%c0_3, %c0_4] : memref<1x256xf32, #tpu.memory_space<vmem>>, vector<1x256xf32>
    %4 = vector.broadcast %3 : vector<1x256xf32> to vector<8x256xf32>
    %5 = arith.addf %2, %4 : vector<8x256xf32>
    %cst_5 = arith.constant 0.000000e+00 : f32
    %6 = vector.broadcast %cst_5 : f32 to vector<8x256xf32>
    %7 = arith.maximumf %5, %6 : vector<8x256xf32>
    %8 = arith.truncf %7 : vector<8x256xf32> to vector<8x256xbf16>
    %c0_6 = arith.constant 0 : index
    %c0_7 = arith.constant 0 : index
    %9 = vector.load %arg4[%c0_6, %c0_7] : memref<256x256xbf16, #tpu.memory_space<vmem>>, vector<256x256xbf16>
    %cst_8 = arith.constant dense<0.000000e+00> : vector<8x256xf32>
    %10 = tpu.matmul %8, %9, %cst_8 {dimension_numbers = #tpu.dot_dimension_numbers<[1], [0], [0], [1], [0, 0, 1, 1], [], []>} : vector<8x256xbf16>, vector<256x256xbf16>, vector<8x256xf32> -> vector<8x256xf32>
    %c0_9 = arith.constant 0 : index
    %c0_10 = arith.constant 0 : index
    %11 = vector.load %arg5[%c0_9, %c0_10] : memref<1x256xf32, #tpu.memory_space<vmem>>, vector<1x256xf32>
    %12 = vector.broadcast %11 : vector<1x256xf32> to vector<8x256xf32>
    %13 = arith.addf %10, %12 : vector<8x256xf32>
    %cst_11 = arith.constant 0.000000e+00 : f32
    %14 = vector.broadcast %cst_11 : f32 to vector<8x256xf32>
    %15 = arith.maximumf %13, %14 : vector<8x256xf32>
    %c0_12 = arith.constant 0 : index
    %c0_13 = arith.constant 0 : index
    %16 = vector.load %arg6[%c0_12, %c0_13] : memref<1x256xf32, #tpu.memory_space<vmem>>, vector<1x256xf32>
    %17 = vector.broadcast %16 : vector<1x256xf32> to vector<8x256xf32>
    %18 = arith.mulf %15, %17 : vector<8x256xf32>
    %cst_14 = arith.constant dense<0.000000e+00> : vector<8xf32>
    %19 = vector.multi_reduction <add>, %18, %cst_14 [1] : vector<8x256xf32> to vector<8xf32>
    %20 = vector.shape_cast %19 : vector<8xf32> to vector<8x1xf32>
    %c0_15 = arith.constant 0 : index
    %c0_16 = arith.constant 0 : index
    %21 = memref.load %arg7[%c0_15, %c0_16] : memref<1x1xf32, #tpu.memory_space<smem>>
    %22 = vector.broadcast %21 : f32 to vector<8x1xf32>
    %23 = arith.addf %20, %22 : vector<8x1xf32>
    %c0_17 = arith.constant 0 : index
    %c0_18 = arith.constant 0 : index
    %24 = vector.load %arg8[%c0_17, %c0_18] : memref<8x1xf32, #tpu.memory_space<vmem>>, vector<8x1xf32>
    tpu.vector_store %arg8[%c0_17, %c0_18], %23 {strides = array<i32>} : memref<8x1xf32, #tpu.memory_space<vmem>>, vector<8x1xf32>,
    return
  }
  func.func @transform_0(%arg0: i32) -> (i32, i32) {
    %c0_i32 = arith.constant 0 : i32
    %c0_i32_0 = arith.constant 0 : i32
    return %arg0, %c0_i32 : i32, i32
  }
  func.func @transform_1(%arg0: i32) -> (i32, i32) {
    %c0_i32 = arith.constant 0 : i32
    %c0_i32_0 = arith.constant 0 : i32
    %c0_i32_1 = arith.constant 0 : i32
    return %c0_i32, %c0_i32_0 : i32, i32
  }
  func.func @transform_2(%arg0: i32) -> (i32, i32) {
    %c0_i32 = arith.constant 0 : i32
    %c0_i32_0 = arith.constant 0 : i32
    %c0_i32_1 = arith.constant 0 : i32
    return %c0_i32, %c0_i32_0 : i32, i32
  }
  func.func @transform_3(%arg0: i32) -> (i32, i32) {
    %c0_i32 = arith.constant 0 : i32
    %c0_i32_0 = arith.constant 0 : i32
    %c0_i32_1 = arith.constant 0 : i32
    return %c0_i32, %c0_i32_0 : i32, i32
  }
  func.func @transform_4(%arg0: i32) -> (i32, i32) {
    %c0_i32 = arith.constant 0 : i32
    %c0_i32_0 = arith.constant 0 : i32
    %c0_i32_1 = arith.constant 0 : i32
    return %c0_i32, %c0_i32_0 : i32, i32
  }
  func.func @transform_5(%arg0: i32) -> (i32, i32) {
    %c0_i32 = arith.constant 0 : i32
    %c0_i32_0 = arith.constant 0 : i32
    %c0_i32_1 = arith.constant 0 : i32
    return %c0_i32, %c0_i32_0 : i32, i32
  }
  func.func @transform_6(%arg0: i32) -> (i32, i32) {
    %c0_i32 = arith.constant 0 : i32
    %c0_i32_0 = arith.constant 0 : i32
    %c0_i32_1 = arith.constant 0 : i32
    return %c0_i32, %c0_i32_0 : i32, i32
  }
  func.func @transform_7(%arg0: i32) -> (i32, i32) {
    %c0_i32 = arith.constant 0 : i32
    %c0_i32_0 = arith.constant 0 : i32
    return %arg0, %c0_i32 : i32, i32
  }
}

</mosaic_0001>

<bundles_post_ra>
// kernel: tpu_custom_call.1
= control target key start
LH: loop header
LB: loop body
LE: loop exit
PB: predicated region body
PF: predicated region fallthrough
CT: control target
= control target key end

     0   :  { %13 = vsyncpa [#allocation4], 0  ;;  %s795_s0 = inlined_call_operand.hbm [shape: bf16[8,128], index: 0, kind: input, shape index: {}]   ;;  %s796_s1 = inlined_call_operand.hbm [shape: bf16[128,256], index: 1, kind: input, shape index: {}]   ;;  %s797_s2 = inlined_call_operand.vmem [shape: f32[1,256], index: 2, kind: input, shape index: {}]   ;;  %s798_s3 = inlined_call_operand.hbm [shape: bf16[256,256], index: 3, kind: input, shape index: {}]   ;;  %s799_s4 = inlined_call_operand.vmem [shape: f32[1,256], index: 4, kind: input, shape index: {}]   ;;  %s800_s5 = inlined_call_operand.vmem [shape: f32[1,256], index: 5, kind: input, shape index: {}]   ;;  %s801_s6 = inlined_call_operand.<no memory space> [shape: f32[1,1], index: 6, kind: input, shape index: {}]   ;;  %s802_s7 = inlined_call_operand.vmem [shape: f32[8,1], index: 7, kind: output, shape index: {}]  }
   0x1   :  { %14 = vsyncpa [#allocation6], 0  ;;  %s692_s24 = smov [#allocation5]   ;;  %s622_s28 = scalar_lea.hbm %s796_s1, 2048 }
   0x2   :  { %s30_s25 = sshll.u32 %s692_s24, 4  ;;  %p623_p0 = scmp.ne.s32.totalorder %s796_s1, %s622_s28  ;;  %s31_s25 = int_to_ptr.vmem [resolvable:$true] %s30_s25 }
   0x3   :  { %p626_p1 = scmp.lt.u32.totalorder %s622_s28, %s796_s1 }
   0x5   :  { %p628_p2 = pnand %p626_p1, %p623_p0 }
   0x7   :  { %631 = shalt.err (!%p628_p2)
}
   0x8   :  { %s632_s10 = scalar_lea.vmem %s31_s25, 2048  ;;  %p637_p4 = scmp.lt.s32.totalorder %s31_s25, %s31_s25 }
   0x9   :  { %p633_p3 = scmp.ne.s32.totalorder %s31_s25, %s632_s10  ;;  %p638_p5 = scmp.lt.s32.totalorder %s632_s10, %s632_s10 }
   0xb   :  { %p639_p6 = por %p638_p5, %p637_p4 }
   0xd   :  { %p640_p7 = pnand %p639_p6, %p633_p3 }
   0xf   :  { %643 = shalt.err (!%p640_p7)
}
  0x10   :  { %s693_s11 = smov 128   ;;  %s694_s12 = smov 8  }
  0x11   :  { %36 = dma.hbm_to_vmem [thread:$0]  %s796_s1, 2048, %s31_s25, [#allocation6], %s693_s11, %s693_s11, %s694_s12  }
  0x12   :  { %s695_s15 = smov [#allocation3]   ;;  %s696_s17 = smov [#allocation7]  }
  0x13   :  { %s21_s16 = sshll.u32 %s695_s15, 4  ;;  %s44_s18 = sshll.u32 %s696_s17, 4  ;;  %s22_s16 = int_to_ptr.vmem [resolvable:$true] %s21_s16  ;;  %s45_s18 = int_to_ptr.vmem [resolvable:$true] %s44_s18 }
  0x14   :  { %s644_s21 = scalar_lea.hbm %s795_s0, 64 }
  0x15   :  { %p645_p8 = scmp.ne.s32.totalorder %s795_s0, %s644_s21  ;;  %p648_p9 = scmp.lt.u32.totalorder %s644_s21, %s795_s0 }
  0x17   :  { %p650_p10 = pnand %p648_p9, %p645_p8 }
  0x19   :  { %653 = shalt.err (!%p650_p10)
}
  0x1a   :  { %s654_s1 = scalar_lea.vmem %s22_s16, 64  ;;  %p659_p12 = scmp.lt.s32.totalorder %s22_s16, %s22_s16 }
  0x1b   :  { %p655_p11 = scmp.ne.s32.totalorder %s22_s16, %s654_s1  ;;  %p660_p13 = scmp.lt.s32.totalorder %s654_s1, %s654_s1 }
  0x1d   :  { %p661_p0 = por %p660_p13, %p659_p12 }
  0x1f   :  { %p662_p1 = pnand %p661_p0, %p655_p11 }
  0x21   :  { %665 = shalt.err (!%p662_p1)
}
  0x22   :  { %24 = dma.hbm_to_vmem [thread:$0]  %s795_s0, 64, %s22_s16, [#allocation4]  }
  0x23   :  { %s666_s30 = scalar_lea.hbm %s798_s3, 4096 }
  0x24   :  { %p667_p2 = scmp.ne.s32.totalorder %s798_s3, %s666_s30  ;;  %p670_p3 = scmp.lt.u32.totalorder %s666_s30, %s798_s3 }
  0x26   :  { %p672_p4 = pnand %p670_p3, %p667_p2 }
  0x28   :  { %675 = shalt.err (!%p672_p4)
}
  0x29   :  { %s676_s14 = scalar_lea.vmem %s45_s18, 4096  ;;  %p681_p6 = scmp.lt.s32.totalorder %s45_s18, %s45_s18 }
  0x2a   :  { %p677_p5 = scmp.ne.s32.totalorder %s45_s18, %s676_s14  ;;  %p682_p7 = scmp.lt.s32.totalorder %s676_s14, %s676_s14 }
  0x2c   :  { %p683_p8 = por %p682_p7, %p681_p6 }
  0x2e   :  { %p684_p9 = pnand %p683_p8, %p677_p5 }
  0x30   :  { %687 = shalt.err (!%p684_p9)
}
  0x31   :  { %50 = dma.hbm_to_vmem [thread:$0]  %s798_s3, 4096, %s45_s18, [#allocation6], %s693_s11, %s693_s11, %s694_s12  }
  0x32   :  { %688 = dma.done.wait [#allocation4], 64  }
  0x33   :  { %689 = vsyncadd [#allocation4], 4294967232 }
  0x34   :  { %690 = dma.done.wait [#allocation6], 6144  }
  0x35   :  { %691 = vsyncadd [#allocation6], 4294961152  ;;  %v697_v0 = vmov 0   ;;  %v550_v1 = vld [vmem:[#allocation5 + $0x4] ss:$8 sps:$4 sm:$0xff]   ;;  %v86_v50 = vlaneseq  ;;  %vm488_vm0 = vcmask 7168  }
  0x36   :  { %208 = vmatprep.mubr.bf16.mxu0 %v697_v0  ;;  %v552_v2 = vld [vmem:[#allocation5] ss:$8 sps:$4 sm:$0xff]   ;;  %176 = vmatprep.subr.bf16.mxu0 %v550_v1  ;;  %v553_v3 = vld [vmem:[#allocation5 + $0x14] ss:$8 sps:$4 sm:$0xff]   ;;  %v555_v4 = vld [vmem:[#allocation5 + $0x10] ss:$8 sps:$4 sm:$0xff]  }
  0x37   :  { %177 = vmatpush1.bf16.msra.mxu0 %v552_v2  ;;  %v556_v5 = vld [vmem:[#allocation5 + $0x24] ss:$8 sps:$4 sm:$0xff]   ;;  %v558_v6 = vld [vmem:[#allocation5 + $0x20] ss:$8 sps:$4 sm:$0xff]   ;;  %v559_v7 = vld [vmem:[#allocation5 + $0x34] ss:$8 sps:$4 sm:$0xff]  }
  0x38   :  { %178 = vmatprep.subr.bf16.mxu0 %v553_v3  ;;  %v561_v8 = vld [vmem:[#allocation5 + $0x30] ss:$8 sps:$4 sm:$0xff]   ;;  %v562_v9 = vld [vmem:[#allocation5 + $0x44] ss:$8 sps:$4 sm:$0xff]   ;;  %v576_v11 = vld [vmem:[#allocation7] ss:$8 sps:$4 sm:$0xff]  }
  0x39   :  { %v574_v10 = vld [vmem:[#allocation7 + $0x4] ss:$8 sps:$4 sm:$0xff]   ;;  %v577_v12 = vld [vmem:[#allocation7 + $0x14] ss:$8 sps:$4 sm:$0xff]   ;;  %v564_v13 = vld [vmem:[#allocation5 + $0x40] ss:$8 sps:$4 sm:$0xff]  }
  0x3a   :  { %425 = vmatprep.subr.bf16.mxu1 %v574_v10  ;;  %v579_v14 = vld [vmem:[#allocation7 + $0x10] ss:$8 sps:$4 sm:$0xff]   ;;  %v580_v15 = vld [vmem:[#allocation7 + $0x24] ss:$8 sps:$4 sm:$0xff]   ;;  %v565_v16 = vld [vmem:[#allocation5 + $0x54] ss:$8 sps:$4 sm:$0xff]  }
  0x3b   :  { %179 = vmatpush1.bf16.msra.mxu0 %v555_v4  ;;  %426 = vmatpush1.bf16.msra.mxu1 %v576_v11  ;;  %v567_v17 = vld [vmem:[#allocation5 + $0x50] ss:$8 sps:$4 sm:$0xff]   ;;  %v582_v18 = vld [vmem:[#allocation7 + $0x20] ss:$8 sps:$4 sm:$0xff]   ;;  %v583_v19 = vld [vmem:[#allocation7 + $0x34] ss:$8 sps:$4 sm:$0xff]  }
  0x3c   :  { %180 = vmatprep.subr.bf16.mxu0 %v556_v5  ;;  %427 = vmatprep.subr.bf16.mxu1 %v577_v12  ;;  %v568_v20 = vld [vmem:[#allocation5 + $0x64] ss:$8 sps:$4 sm:$0xff]   ;;  %v570_v21 = vld [vmem:[#allocation5 + $0x60] ss:$8 sps:$4 sm:$0xff]   ;;  %v585_v22 = vld [vmem:[#allocation7 + $0x30] ss:$8 sps:$4 sm:$0xff]  }
  0x3d   :  { %v586_v23 = vld [vmem:[#allocation7 + $0x44] ss:$8 sps:$4 sm:$0xff]   ;;  %v571_v24 = vld [vmem:[#allocation5 + $0x74] ss:$8 sps:$4 sm:$0xff]   ;;  %v573_v25 = vld [vmem:[#allocation5 + $0x70] ss:$8 sps:$4 sm:$0xff]  }
  0x3e   :  { %v588_v26 = vld [vmem:[#allocation7 + $0x40] ss:$8 sps:$4 sm:$0xff]   ;;  %v589_v27 = vld [vmem:[#allocation7 + $0x54] ss:$8 sps:$4 sm:$0xff]   ;;  %v591_v28 = vld [vmem:[#allocation7 + $0x50] ss:$8 sps:$4 sm:$0xff]  }
  0x3f   :  { %181 = vmatpush1.bf16.msra.mxu0 %v558_v6  ;;  %428 = vmatpush1.bf16.msra.mxu1 %v579_v14  ;;  %v67_v29 = vld [vmem:[#allocation3] sm:$0xf]  ;;  %v592_v30 = vld [vmem:[#allocation7 + $0x64] ss:$8 sps:$4 sm:$0xff]   ;;  %v594_v31 = vld [vmem:[#allocation7 + $0x60] ss:$8 sps:$4 sm:$0xff]  }
  0x40   :  { %182 = vmatprep.subr.bf16.mxu0 %v559_v7  ;;  %429 = vmatprep.subr.bf16.mxu1 %v580_v15  ;;  %v595_v32 = vld [vmem:[#allocation7 + $0x74] ss:$8 sps:$4 sm:$0xff]   ;;  %v597_v33 = vld [vmem:[#allocation7 + $0x70] ss:$8 sps:$4 sm:$0xff]   ;;  %v598_v34 = vld [vmem:[#allocation7 + $0x84] ss:$8 sps:$4 sm:$0xff]  }
  0x41   :  { %v600_v35 = vld [vmem:[#allocation7 + $0x80] ss:$8 sps:$4 sm:$0xff]   ;;  %v601_v36 = vld [vmem:[#allocation7 + $0x94] ss:$8 sps:$4 sm:$0xff]   ;;  %v603_v37 = vld [vmem:[#allocation7 + $0x90] ss:$8 sps:$4 sm:$0xff]  }
  0x42   :  { %v604_v38 = vld [vmem:[#allocation7 + $0xa4] ss:$8 sps:$4 sm:$0xff]   ;;  %v606_v39 = vld [vmem:[#allocation7 + $0xa0] ss:$8 sps:$4 sm:$0xff]   ;;  %v607_v40 = vld [vmem:[#allocation7 + $0xb4] ss:$8 sps:$4 sm:$0xff]  }
  0x43   :  { %183 = vmatpush1.bf16.msra.mxu0 %v561_v8  ;;  %430 = vmatpush1.bf16.msra.mxu1 %v582_v18  ;;  %v609_v41 = vld [vmem:[#allocation7 + $0xb0] ss:$8 sps:$4 sm:$0xff]   ;;  %v610_v42 = vld [vmem:[#allocation7 + $0xc4] ss:$8 sps:$4 sm:$0xff]   ;;  %v612_v43 = vld [vmem:[#allocation7 + $0xc0] ss:$8 sps:$4 sm:$0xff]  }
  0x44   :  { %184 = vmatprep.subr.bf16.mxu0 %v562_v9  ;;  %431 = vmatprep.subr.bf16.mxu1 %v583_v19  ;;  %v613_v44 = vld [vmem:[#allocation7 + $0xd4] ss:$8 sps:$4 sm:$0xff]   ;;  %v615_v45 = vld [vmem:[#allocation7 + $0xd0] ss:$8 sps:$4 sm:$0xff]   ;;  %v616_v46 = vld [vmem:[#allocation7 + $0xe4] ss:$8 sps:$4 sm:$0xff]  }
  0x45   :  { %v618_v47 = vld [vmem:[#allocation7 + $0xe0] ss:$8 sps:$4 sm:$0xff]   ;;  %v619_v48 = vld [vmem:[#allocation7 + $0xf4] ss:$8 sps:$4 sm:$0xff]   ;;  %v621_v49 = vld [vmem:[#allocation7 + $0xf0] ss:$8 sps:$4 sm:$0xff]  }
  0x46   :  { %v87_v51 = vshrl.u32 %v86_v50, 7  ;;  %v84_v53 = vld [vmem:[%s797_s2] sm:$0x3] }
  0x47   :  { %185 = vmatpush1.bf16.msra.mxu0 %v564_v13  ;;  %432 = vmatpush1.bf16.msra.mxu1 %v585_v22  ;;  %v253_v3 = vld [vmem:[%s799_s4] sm:$0x3] }
  0x48   :  { %186 = vmatprep.subr.bf16.mxu0 %v565_v16  ;;  %433 = vmatprep.subr.bf16.mxu1 %v586_v23  ;;  %v88_v52 = vsub.s32 0, %v87_v51  ;;  %v92_v54 = vsub.s32 1, %v87_v51  ;;  %v468_v6 = vld [vmem:[%s800_s5] sm:$0x3] }
  0x4a   :  { %v89_v55 = vrot.slane %v84_v53, %v88_v52  ;;  %v93_v56 = vrot.slane %v84_v53, %v92_v54  ;;  %v258_v4 = vrot.slane %v253_v3, %v88_v52  ;;  %v262_v5 = vrot.slane %v253_v3, %v92_v54 }
  0x4b   :  { %187 = vmatpush1.bf16.msra.mxu0 %v567_v17  ;;  %434 = vmatpush1.bf16.msra.mxu1 %v588_v26  ;;  %v473_v10 = vrot.slane %v468_v6, %v88_v52  ;;  %v477_v13 = vrot.slane %v468_v6, %v92_v54 }
  0x4c   :  { %188 = vmatprep.subr.bf16.mxu0 %v568_v20  ;;  %435 = vmatprep.subr.bf16.mxu1 %v589_v27  ;;  %v486_v20 = vstv %s801_s6 }
  0x4f   :  { %189 = vmatpush1.bf16.msra.mxu0 %v570_v21  ;;  %436 = vmatpush1.bf16.msra.mxu1 %v591_v28 }
  0x50   :  { %190 = vmatprep.subr.bf16.mxu0 %v571_v24  ;;  %437 = vmatprep.subr.bf16.mxu1 %v592_v30 }
  0x53   :  { %191 = vmatpush1.bf16.msra.mxu0 %v573_v25  ;;  %438 = vmatpush1.bf16.msra.mxu1 %v594_v31 }
  0x54   :  { %439 = vmatprep.subr.bf16.mxu1 %v595_v32 }
  0x56   :  { %209 = vmatmul.mubr.bf16.vlgmr.msra.gmra.mrb[0].mxu0 %v67_v29 }
  0x57   :  { %440 = vmatpush1.bf16.msra.mxu1 %v597_v33 }
  0x58   :  { %441 = vmatprep.subr.bf16.mxu1 %v598_v34 }
  0x5b   :  { %442 = vmatpush1.bf16.msra.mxu1 %v600_v35 }
  0x5c   :  { %443 = vmatprep.subr.bf16.mxu1 %v601_v36 }
  0x5f   :  { %444 = vmatpush1.bf16.msra.mxu1 %v603_v37 }
  0x60   :  { %445 = vmatprep.subr.bf16.mxu1 %v604_v38 }
  0x63   :  { %446 = vmatpush1.bf16.msra.mxu1 %v606_v39 }
  0x64   :  { %447 = vmatprep.subr.bf16.mxu1 %v607_v40 }
  0x67   :  { %448 = vmatpush1.bf16.msra.mxu1 %v609_v41 }
  0x68   :  { %449 = vmatprep.subr.bf16.mxu1 %v610_v42 }
  0x6b   :  { %450 = vmatpush1.bf16.msra.mxu1 %v612_v43 }
  0x6c   :  { %451 = vmatprep.subr.bf16.mxu1 %v613_v44 }
  0x6f   :  { %452 = vmatpush1.bf16.msra.mxu1 %v615_v45 }
  0x70   :  { %453 = vmatprep.subr.bf16.mxu1 %v616_v46 }
  0x73   :  { %454 = vmatpush1.bf16.msra.mxu1 %v618_v47 }
  0x74   :  { %455 = vmatprep.subr.bf16.mxu1 %v619_v48 }
  0x77   :  { %456 = vmatpush1.bf16.msra.mxu1 %v621_v49 }
 0x129   :  { %v210_v57 = vpop.f32.mrb[0].mxu0 }
 0x12a   :  { %v211_v58 = vadd.f32 %v210_v57, %v89_v55  ;;  %v212_v59 = vpop.f32.mrb[1].mxu0 }
 0x12b   :  { %v213_v60 = vadd.f32 %v212_v59, %v93_v56  ;;  %v214_v61 = vpop.f32.mrb[2].mxu0 }
 0x12c   :  { %v217_v62 = vmax.f32 %v211_v58, 0.0  ;;  %v215_v63 = vpop.f32.mrb[3].mxu0 }
 0x12d   :  { %v218_v0 = vmax.f32 %v213_v60, 0.0 }
 0x12e   :  { %v219_v2 = vpack.c.bf16 %v217_v62, %v217_v62 }
 0x12f   :  { %v220_v1 = vpack.c.bf16 %v218_v0, %v218_v0 }
 0x131   :  { %457 = vmatprep.mubr.bf16.mxu1 %v220_v1 }
 0x132   :  { %458 = vmatmul.mubr.bf16.vlgmr.msra.gmra.mrb[0].mxu1 %v219_v2 }
 0x205   :  { %v459_v7 = vpop.f32.mrb[0].mxu1 }
 0x206   :  { %v460_v8 = vadd.f32 %v459_v7, %v258_v4  ;;  %v461_v9 = vpop.f32.mrb[1].mxu1 }
 0x207   :  { %v462_v11 = vadd.f32 %v461_v9, %v262_v5  ;;  %v463_v12 = vpop.f32.mrb[2].mxu1 }
 0x208   :  { %v466_v14 = vmax.f32 %v460_v8, 0.0  ;;  %v464_v15 = vpop.f32.mrb[3].mxu1 }
 0x209   :  { %v467_v16 = vmax.f32 %v462_v11, 0.0 }
 0x20a   :  { %v480_v17 = vmul.f32 %v473_v10, %v466_v14 }
 0x20b   :  { %v481_v18 = vmul.f32 %v477_v13, %v467_v16 }
 0x20d   :  { %v482_v19 = vadd.f32 %v481_v18, %v480_v17 }
 0x20f   :  { %483 = vadd.xlane.f32.xlu0 %v482_v19 }
 0x29c   :  { %v484_v21 = vpop.xlane.xlu0 %483 }
 0x29d   :  { %v487_v22 = vadd.f32 %v486_v20, %v484_v21 }
 0x29f   :  { %489 = vst.msk [vmem:[%s802_s7] sm:$0xff] %vm488_vm0, %v487_v22 }
 0x2a0   :  { %494 = vsyncpa [#allocation4], 1 }
 0x2a1   :  { %495 = vsyncpa [#allocation6], 1 }

</bundles_post_ra>
